<compile_context>
chip_gen: v5e
topology: v5e:2x2
jax: 0.10.0
libtpu: 0.0.40
codegen_flags: <defaults>
</compile_context>

<pallas_src>
import functools

import numpy as np
import jax
import jax.numpy as jnp
from jax.experimental import pallas as pl
from jax.experimental.pallas import tpu as pltpu

_LANE = 128
_SUBLANE = 8


def _round_up(v, m):
    return (v + m - 1) // m * m


def _mlp_kernel(x_ref, *refs, negative_slope, dims_p):
    """Fused MLP forward over one batch-row tile.

    refs = (w0, w1, ..., w_{L-1}, bias_stack, out_ref).
    Hidden layers apply LeakyReLU; the last weight is the output Linear.
    """
    out_ref = refs[-1]
    b_ref = refs[-2]                 # [n_layers, max_D_pad]  (f32)
    w_refs = refs[:-2]
    n_layers = len(w_refs)

    h = x_ref[...].astype(jnp.float32)                     # [tile_b, D0_pad]
    for li in range(n_layers):
        w = w_refs[li][...]                                # [Di_pad, Di+1_pad]
        b = b_ref[li:li + 1, :dims_p[li + 1]]              # [1, Di+1_pad]
        y = jnp.dot(h.astype(w.dtype), w,
                    preferred_element_type=jnp.float32) + b
        if li < n_layers - 1:
            h = jnp.maximum(y, negative_slope * y)         # LeakyReLU (f32)
        else:
            h = y
    out_ref[...] = h.astype(out_ref.dtype)


def prepare_params(layer_weights, layer_biases, matmul_dtype=jnp.float32):
    """One-time preprocessing (NOT per forward call).

    layer_weights[i]: [d_i, d_{i+1}] (transposed vs. torch nn.Linear.weight),
    layer_biases[i]:  [d_{i+1}]. The final pair is fc_out.

    Pads every feature dim to a multiple of 128 (zero padding is inert:
    zero columns -> LeakyReLU(0)=0 -> zero rows contribute nothing), casts
    matmul weights to `matmul_dtype`, and stacks all biases (kept f32).
    """
    dims = [layer_weights[0].shape[0]] + [w.shape[1] for w in layer_weights]
    dims_p = tuple(_round_up(d, _LANE) for d in dims)

    padded_weights = []
    for li, w in enumerate(layer_weights):
        w_p = jnp.pad(w, ((0, dims_p[li] - w.shape[0]),
                          (0, dims_p[li + 1] - w.shape[1])))
        padded_weights.append(w_p.astype(matmul_dtype))

    max_d = max(dims_p[1:])
    bias_stack = jnp.stack(
        [jnp.pad(b.astype(jnp.float32), (0, max_d - b.shape[-1]))
         for b in layer_biases])                            # [n_layers, max_d]

    return padded_weights, bias_stack, dims_p


@functools.partial(jax.jit,
                   static_argnames=("output_dim", "negative_slope",
                                    "block_rows"))
def simple_network_forward(x, padded_weights, bias_stack, *, output_dim,
                           negative_slope=0.01, block_rows=256):
    """Fused SimpleNetwork forward on pre-padded params."""
    N, _ = x.shape
    dims_p = tuple(w.shape[0] for w in padded_weights) + \
        (padded_weights[-1].shape[1],)

    # Batch tile: multiple of 8 (8,128 constraint), single step for small N.
    tile_b = _round_up(min(block_rows, N), _SUBLANE)
    n_pad = _round_up(N, tile_b)
    x_p = jnp.pad(x, ((0, n_pad - N), (0, dims_p[0] - x.shape[1])))

    # --- VMEM budget: weights single-buffered, x/out tiles double-buffered.
    weight_bytes = sum(int(w.size) * w.dtype.itemsize for w in padded_weights)
    bias_bytes = int(bias_stack.size) * 4
    io_bytes = 2 * tile_b * (dims_p[0] + dims_p[-1]) * x.dtype.itemsize
    act_bytes = 2 * tile_b * max(dims_p) * 4          # f32 working activations
    needed = weight_bytes + bias_bytes + io_bytes + act_bytes
    try:
        phys_vmem = pltpu.get_tpu_info().vmem_capacity_bytes
    except Exception:  # pragma: no cover - conservative v7x-sized fallback
        phys_vmem = 64 << 20
    vmem_limit = int(min(max(2 * needed, 32 << 20), int(phys_vmem * 0.85)))

    # --- BlockSpecs: x/out tiled over batch; params resident, single-buffered.
    const_map = lambda i: (0, 0)
    in_specs = [pl.BlockSpec((tile_b, dims_p[0]), lambda i: (i, 0))]
    for w in padded_weights:
        in_specs.append(pl.BlockSpec(w.shape, const_map,
                                     pipeline_mode=pl.Buffered(1)))
    in_specs.append(pl.BlockSpec(bias_stack.shape, const_map,
                                 pipeline_mode=pl.Buffered(1)))

    out_p = pl.pallas_call(
        functools.partial(_mlp_kernel,
                          negative_slope=negative_slope, dims_p=dims_p),
        out_shape=jax.ShapeDtypeStruct((n_pad, dims_p[-1]), x.dtype),
        grid=(n_pad // tile_b,),
        in_specs=in_specs,
        out_specs=pl.BlockSpec((tile_b, dims_p[-1]), lambda i: (i, 0)),
        compiler_params=pltpu.CompilerParams(
            dimension_semantics=("parallel",),
            vmem_limit_bytes=vmem_limit),
    )(x_p, *padded_weights, bias_stack)

    return out_p[:N, :output_dim]


def _reference(x, layer_weights, layer_biases, negative_slope=0.01):
    """Pure-JAX reference mirroring the PyTorch forward (batchnorm=False)."""
    h = x
    for w, b in zip(layer_weights[:-1], layer_biases[:-1]):
        h = h @ w + b
        h = jnp.where(h >= 0, h, negative_slope * h)
    return h @ layer_weights[-1] + layer_biases[-1]


if __name__ == "__main__":
    batch, input_dim, hidden_dims, output_dim = 16, 32, [64, 64], 32

    key = jax.random.PRNGKey(0)
    dims = [input_dim] + hidden_dims
    weights, biases = [], []
    for i in range(len(dims) - 1):
        key, kw, kb = jax.random.split(key, 3)
        weights.append(
            jax.random.normal(kw, (dims[i], dims[i + 1]), jnp.float32) * 0.1)
        biases.append(
            jax.random.normal(kb, (dims[i + 1],), jnp.float32) * 0.1)
    key, kw, kb, kx = jax.random.split(key, 4)
    weights.append(
        jax.random.normal(kw, (dims[-1], output_dim), jnp.float32) * 0.1)
    biases.append(jax.random.normal(kb, (output_dim,), jnp.float32) * 0.1)

    x = jax.random.normal(kx, (batch, input_dim), jnp.float32)

    # One-time param preprocessing (pad + optional dtype cast), then forward.
    # (Use matmul_dtype=jnp.bfloat16 on v6e/v7x for ~3-8x matmul throughput.)
    padded_weights, bias_stack, _ = prepare_params(
        weights, biases, matmul_dtype=jnp.float32)
    out = simple_network_forward(x, padded_weights, bias_stack,
                                 output_dim=output_dim)
    out = jax.block_until_ready(out)

    ref = _reference(x, weights, biases)
    assert out.shape == (batch, output_dim), out.shape
    assert jnp.allclose(out, ref, atol=1e-5, rtol=1e-5), (
        f"max abs err {jnp.max(jnp.abs(out - ref))}")

    print("KERNEL_OK")
</pallas_src>

<mosaic_0001>
module attributes {stable_mosaic.version = 11 : i64} {
  func.func @_mlp_kernel(%arg0: i32, %arg1: memref<16x128xf32, #tpu.memory_space<vmem>>, %arg2: memref<128x128xf32, #tpu.memory_space<vmem>>, %arg3: memref<128x128xf32, #tpu.memory_space<vmem>>, %arg4: memref<128x128xf32, #tpu.memory_space<vmem>>, %arg5: memref<3x128xf32, #tpu.memory_space<vmem>>, %arg6: memref<16x128xf32, #tpu.memory_space<vmem>>) attributes {dimension_semantics = [#tpu.dimension_semantics<parallel>], iteration_bounds = array<i64: 1>, scalar_prefetch = 0 : i64, scratch_operands = 0 : i64, tpu.core_type = #tpu.core_type<tc>, window_params = [{transform_indices = @transform_0, window_bounds = array<i64: 16, 128>}, {pipeline_mode = #tpu.pipeline_mode<synchronous>, transform_indices = @transform_1, window_bounds = array<i64: 128, 128>}, {pipeline_mode = #tpu.pipeline_mode<synchronous>, transform_indices = @transform_2, window_bounds = array<i64: 128, 128>}, {pipeline_mode = #tpu.pipeline_mode<synchronous>, transform_indices = @transform_3, window_bounds = array<i64: 128, 128>}, {pipeline_mode = #tpu.pipeline_mode<synchronous>, transform_indices = @transform_4, window_bounds = array<i64: 3, 128>}, {transform_indices = @transform_5, window_bounds = array<i64: 16, 128>}]} {
    %c0 = arith.constant 0 : index
    %c0_0 = arith.constant 0 : index
    %0 = vector.load %arg1[%c0, %c0_0] : memref<16x128xf32, #tpu.memory_space<vmem>>, vector<16x128xf32>
    %c0_1 = arith.constant 0 : index
    %c0_2 = arith.constant 0 : index
    %1 = vector.load %arg2[%c0_1, %c0_2] : memref<128x128xf32, #tpu.memory_space<vmem>>, vector<128x128xf32>
    %c0_3 = arith.constant 0 : index
    %c0_4 = arith.constant 0 : index
    %2 = vector.load %arg5[%c0_3, %c0_4] : memref<3x128xf32, #tpu.memory_space<vmem>>, vector<1x128xf32>
    %cst = arith.constant dense<0.000000e+00> : vector<16x128xf32>
    %3 = tpu.matmul %0, %1, %cst {dimension_numbers = #tpu.dot_dimension_numbers<[1], [0], [0], [1], [0, 0, 1, 1], [], []>} : vector<16x128xf32>, vector<128x128xf32>, vector<16x128xf32> -> vector<16x128xf32>
    %4 = vector.broadcast %2 : vector<1x128xf32> to vector<16x128xf32>
    %5 = arith.addf %3, %4 : vector<16x128xf32>
    %cst_5 = arith.constant 0.00999999977 : f32
    %6 = vector.broadcast %cst_5 : f32 to vector<16x128xf32>
    %7 = arith.mulf %6, %5 : vector<16x128xf32>
    %8 = arith.maximumf %5, %7 : vector<16x128xf32>
    %c0_6 = arith.constant 0 : index
    %c0_7 = arith.constant 0 : index
    %9 = vector.load %arg3[%c0_6, %c0_7] : memref<128x128xf32, #tpu.memory_space<vmem>>, vector<128x128xf32>
    %c1 = arith.constant 1 : index
    %c0_8 = arith.constant 0 : index
    %10 = vector.load %arg5[%c1, %c0_8] : memref<3x128xf32, #tpu.memory_space<vmem>>, vector<1x128xf32>
    %cst_9 = arith.constant dense<0.000000e+00> : vector<16x128xf32>
    %11 = tpu.matmul %8, %9, %cst_9 {dimension_numbers = #tpu.dot_dimension_numbers<[1], [0], [0], [1], [0, 0, 1, 1], [], []>} : vector<16x128xf32>, vector<128x128xf32>, vector<16x128xf32> -> vector<16x128xf32>
    %12 = vector.broadcast %10 : vector<1x128xf32> to vector<16x128xf32>
    %13 = arith.addf %11, %12 : vector<16x128xf32>
    %cst_10 = arith.constant 0.00999999977 : f32
    %14 = vector.broadcast %cst_10 : f32 to vector<16x128xf32>
    %15 = arith.mulf %14, %13 : vector<16x128xf32>
    %16 = arith.maximumf %13, %15 : vector<16x128xf32>
    %c0_11 = arith.constant 0 : index
    %c0_12 = arith.constant 0 : index
    %17 = vector.load %arg4[%c0_11, %c0_12] : memref<128x128xf32, #tpu.memory_space<vmem>>, vector<128x128xf32>
    %c2 = arith.constant 2 : index
    %c0_13 = arith.constant 0 : index
    %18 = vector.load %arg5[%c2, %c0_13] : memref<3x128xf32, #tpu.memory_space<vmem>>, vector<1x128xf32>
    %cst_14 = arith.constant dense<0.000000e+00> : vector<16x128xf32>
    %19 = tpu.matmul %16, %17, %cst_14 {dimension_numbers = #tpu.dot_dimension_numbers<[1], [0], [0], [1], [0, 0, 1, 1], [], []>} : vector<16x128xf32>, vector<128x128xf32>, vector<16x128xf32> -> vector<16x128xf32>
    %20 = vector.broadcast %18 : vector<1x128xf32> to vector<16x128xf32>
    %21 = arith.addf %19, %20 : vector<16x128xf32>
    %c0_15 = arith.constant 0 : index
    %c0_16 = arith.constant 0 : index
    %22 = vector.load %arg6[%c0_15, %c0_16] : memref<16x128xf32, #tpu.memory_space<vmem>>, vector<16x128xf32>
    tpu.vector_store %arg6[%c0_15, %c0_16], %21 {strides = array<i32>} : memref<16x128xf32, #tpu.memory_space<vmem>>, vector<16x128xf32>,
    return
  }
  func.func @transform_0(%arg0: i32) -> (i32, i32) {
    %c0_i32 = arith.constant 0 : i32
    %c0_i32_0 = arith.constant 0 : i32
    return %arg0, %c0_i32 : i32, i32
  }
  func.func @transform_1(%arg0: i32) -> (i32, i32) {
    %c0_i32 = arith.constant 0 : i32
    %c0_i32_0 = arith.constant 0 : i32
    %c0_i32_1 = arith.constant 0 : i32
    return %c0_i32, %c0_i32_0 : i32, i32
  }
  func.func @transform_2(%arg0: i32) -> (i32, i32) {
    %c0_i32 = arith.constant 0 : i32
    %c0_i32_0 = arith.constant 0 : i32
    %c0_i32_1 = arith.constant 0 : i32
    return %c0_i32, %c0_i32_0 : i32, i32
  }
  func.func @transform_3(%arg0: i32) -> (i32, i32) {
    %c0_i32 = arith.constant 0 : i32
    %c0_i32_0 = arith.constant 0 : i32
    %c0_i32_1 = arith.constant 0 : i32
    return %c0_i32, %c0_i32_0 : i32, i32
  }
  func.func @transform_4(%arg0: i32) -> (i32, i32) {
    %c0_i32 = arith.constant 0 : i32
    %c0_i32_0 = arith.constant 0 : i32
    %c0_i32_1 = arith.constant 0 : i32
    return %c0_i32, %c0_i32_0 : i32, i32
  }
  func.func @transform_5(%arg0: i32) -> (i32, i32) {
    %c0_i32 = arith.constant 0 : i32
    %c0_i32_0 = arith.constant 0 : i32
    return %arg0, %c0_i32 : i32, i32
  }
}

</mosaic_0001>

<bundles_post_ra>
// kernel: simple_network_forward.1
= control target key start
LH: loop header
LB: loop body
LE: loop exit
PB: predicated region body
PF: predicated region fallthrough
CT: control target
= control target key end

     0   :  { %10 = vsyncpa [#allocation3], 0  ;;  %s425_s0 = inlined_call_operand.vmem [shape: f32[16,128], index: 0, kind: input, shape index: {}]   ;;  %s426_s1 = inlined_call_operand.hbm [shape: f32[128,128], index: 1, kind: input, shape index: {}]   ;;  %s427_s2 = inlined_call_operand.hbm [shape: f32[128,128], index: 2, kind: input, shape index: {}]   ;;  %s428_s3 = inlined_call_operand.hbm [shape: f32[128,128], index: 3, kind: input, shape index: {}]   ;;  %s429_s4 = inlined_call_operand.vmem [shape: f32[3,128], index: 4, kind: input, shape index: {}]   ;;  %s430_s5 = inlined_call_operand.hbm [shape: f32[16,128], index: 5, kind: output, shape index: {}]  }
   0x1   :  { %11 = vsyncpa [#allocation6], 0 }
   0x2   :  { %12 = vsyncpa [#allocation4], 0  ;;  %s32_s20 = sshll.u32 %s427_s2, 4  ;;  %s350_s21 = smov [#allocation5]   ;;  %s33_s20 = int_to_ptr.hbm [resolvable:$true] %s32_s20 }
   0x3   :  { %s34_s22 = sshll.u32 %s350_s21, 4  ;;  %s19_s25 = sshll.u32 %s426_s1, 4  ;;  %s35_s22 = int_to_ptr.vmem [resolvable:$true] %s34_s22  ;;  %s20_s25 = int_to_ptr.hbm [resolvable:$true] %s19_s25 }
   0x4   :  { %s351_s26 = smov 128   ;;  %s352_s27 = smov 8  }
   0x5   :  { %40 = dma.hbm_to_vmem [thread:$0]  %s33_s20, 2048, %s35_s22, [#allocation6], %s351_s26, %s351_s26, %s352_s27  }
   0x6   :  { %s353_s28 = smov [#allocation2]   ;;  %s45_s2 = sshll.u32 %s428_s3, 4  ;;  %s46_s2 = int_to_ptr.hbm [resolvable:$true] %s45_s2 }
   0x7   :  { %s21_s29 = sshll.u32 %s353_s28, 4  ;;  %s354_s1 = smov [#allocation7]   ;;  %s22_s29 = int_to_ptr.vmem [resolvable:$true] %s21_s29 }
   0x8   :  { %27 = dma.hbm_to_vmem [thread:$0]  %s20_s25, 2048, %s22_s29, [#allocation3], %s351_s26, %s351_s26, %s352_s27  }
   0x9   :  { %s47_s7 = sshll.u32 %s354_s1, 4  ;;  %s48_s7 = int_to_ptr.vmem [resolvable:$true] %s47_s7 }
   0xa   :  { %53 = dma.hbm_to_vmem [thread:$0]  %s46_s2, 2048, %s48_s7, [#allocation6], %s351_s26, %s351_s26, %s352_s27  }
   0xb   :  { %344 = dma.done.wait [#allocation3], 2048  }
   0xc   :  { %345 = vsyncadd [#allocation3], 4294965248 }
   0xd   :  { %346 = dma.done.wait [#allocation6], 4096  }
   0xe   :  { %347 = vsyncadd [#allocation6], 4294963200  ;;  %v85_v0 = vld [vmem:[#allocation2 + $0x78] sm:$0xff]  ;;  %v84_v1 = vld [vmem:[#allocation2 + $0x70] sm:$0xff]  ;;  %s355_s16 = smov [#allocation8]   ;;  %s209_s20 = sshll.u32 %s430_s5, 4  ;;  %s210_s20 = int_to_ptr.hbm [resolvable:$true] %s209_s20 }
   0xf   :  { %88 = vmatpush.msra.mxu0 %v85_v0  ;;  %223 = vmatpush.msra.mxu3 %v85_v0  ;;  %v83_v2 = vld [vmem:[#allocation2 + $0x68] sm:$0xff]  ;;  %v82_v3 = vld [vmem:[#allocation2 + $0x60] sm:$0xff]  ;;  %v81_v4 = vld [vmem:[#allocation2 + $0x58] sm:$0xff]  ;;  %s207_s17 = sshll.u32 %s355_s16, 4  ;;  %s208_s17 = int_to_ptr.vmem [resolvable:$true] %s207_s17 }
  0x10   :  { %v130_v5 = vld [vmem:[#allocation5 + $0x78] sm:$0xff]  ;;  %v129_v6 = vld [vmem:[#allocation5 + $0x70] sm:$0xff]  ;;  %v128_v8 = vld [vmem:[#allocation5 + $0x68] sm:$0xff] }
  0x11   :  { %89 = vmatpush.msra.mxu0 %v84_v1  ;;  %224 = vmatpush.msra.mxu3 %v84_v1  ;;  %v80_v7 = vld [vmem:[#allocation2 + $0x50] sm:$0xff]  ;;  %v79_v9 = vld [vmem:[#allocation2 + $0x48] sm:$0xff]  ;;  %v127_v10 = vld [vmem:[#allocation5 + $0x60] sm:$0xff] }
  0x12   :  { %133 = vmatpush.msra.mxu1 %v130_v5  ;;  %v78_v11 = vld [vmem:[#allocation2 + $0x40] sm:$0xff]  ;;  %v126_v12 = vld [vmem:[#allocation5 + $0x58] sm:$0xff]  ;;  %v125_v14 = vld [vmem:[#allocation5 + $0x50] sm:$0xff] }
  0x13   :  { %90 = vmatpush.msra.mxu0 %v83_v2  ;;  %225 = vmatpush.msra.mxu3 %v83_v2  ;;  %v77_v13 = vld [vmem:[#allocation2 + $0x38] sm:$0xff]  ;;  %v76_v15 = vld [vmem:[#allocation2 + $0x30] sm:$0xff]  ;;  %v124_v16 = vld [vmem:[#allocation5 + $0x48] sm:$0xff] }
  0x14   :  { %134 = vmatpush.msra.mxu1 %v129_v6  ;;  %v75_v17 = vld [vmem:[#allocation2 + $0x28] sm:$0xff]  ;;  %v123_v18 = vld [vmem:[#allocation5 + $0x40] sm:$0xff]  ;;  %v122_v20 = vld [vmem:[#allocation5 + $0x38] sm:$0xff] }
  0x15   :  { %91 = vmatpush.msra.mxu0 %v82_v3  ;;  %226 = vmatpush.msra.mxu3 %v82_v3  ;;  %v74_v19 = vld [vmem:[#allocation2 + $0x20] sm:$0xff]  ;;  %v73_v21 = vld [vmem:[#allocation2 + $0x18] sm:$0xff]  ;;  %v121_v22 = vld [vmem:[#allocation5 + $0x30] sm:$0xff] }
  0x16   :  { %135 = vmatpush.msra.mxu1 %v128_v8  ;;  %v72_v23 = vld [vmem:[#allocation2 + $0x10] sm:$0xff]  ;;  %v120_v24 = vld [vmem:[#allocation5 + $0x28] sm:$0xff]  ;;  %v119_v26 = vld [vmem:[#allocation5 + $0x20] sm:$0xff] }
  0x17   :  { %92 = vmatpush.msra.mxu0 %v81_v4  ;;  %227 = vmatpush.msra.mxu3 %v81_v4  ;;  %v71_v25 = vld [vmem:[#allocation2 + $0x8] sm:$0xff]  ;;  %v70_v27 = vld [vmem:[#allocation2] sm:$0xff]  ;;  %v118_v30 = vld [vmem:[#allocation5 + $0x18] sm:$0xff] }
  0x18   :  { %136 = vmatpush.msra.mxu1 %v127_v10  ;;  %v68_v28 = vld [vmem:[%s425_s0] sm:$0xff]  ;;  %v69_v29 = vld [vmem:[%s425_s0 + $0x8] sm:$0xff]  ;;  %v117_v31 = vld [vmem:[#allocation5 + $0x10] sm:$0xff] }
  0x19   :  { %93 = vmatpush.msra.mxu0 %v80_v7  ;;  %228 = vmatpush.msra.mxu3 %v80_v7  ;;  %v116_v32 = vld [vmem:[#allocation5 + $0x8] sm:$0xff]  ;;  %v115_v33 = vld [vmem:[#allocation5] sm:$0xff]  ;;  %v175_v34 = vld [vmem:[#allocation7 + $0x78] sm:$0xff] }
  0x1a   :  { %137 = vmatpush.msra.mxu1 %v126_v12  ;;  %v174_v35 = vld [vmem:[#allocation7 + $0x70] sm:$0xff]  ;;  %178 = vmatpush.msra.mxu2 %v175_v34  ;;  %v173_v36 = vld [vmem:[#allocation7 + $0x68] sm:$0xff]  ;;  %v172_v37 = vld [vmem:[#allocation7 + $0x60] sm:$0xff] }
  0x1b   :  { %94 = vmatpush.msra.mxu0 %v79_v9  ;;  %229 = vmatpush.msra.mxu3 %v79_v9  ;;  %v171_v38 = vld [vmem:[#allocation7 + $0x58] sm:$0xff]  ;;  %v170_v39 = vld [vmem:[#allocation7 + $0x50] sm:$0xff]  ;;  %v169_v40 = vld [vmem:[#allocation7 + $0x48] sm:$0xff] }
  0x1c   :  { %138 = vmatpush.msra.mxu1 %v125_v14  ;;  %179 = vmatpush.msra.mxu2 %v174_v35  ;;  %v168_v41 = vld [vmem:[#allocation7 + $0x40] sm:$0xff]  ;;  %v167_v43 = vld [vmem:[#allocation7 + $0x38] sm:$0xff]  ;;  %v166_v44 = vld [vmem:[#allocation7 + $0x30] sm:$0xff] }
  0x1d   :  { %95 = vmatpush.msra.mxu0 %v78_v11  ;;  %230 = vmatpush.msra.mxu3 %v78_v11  ;;  %v245_v42 = vld [vmem:[%s429_s4] ss:$0 sm:$0xff]  ;;  %v165_v47 = vld [vmem:[#allocation7 + $0x28] sm:$0xff]  ;;  %v163_v55 = vld [vmem:[#allocation7 + $0x18] sm:$0xff] }
  0x1e   :  { %139 = vmatpush.msra.mxu1 %v124_v16  ;;  %180 = vmatpush.msra.mxu2 %v173_v36  ;;  %v164_v49 = vld [vmem:[#allocation7 + $0x20] sm:$0xff]  ;;  %v162_v56 = vld [vmem:[#allocation7 + $0x10] sm:$0xff]  ;;  %v161_v57 = vld [vmem:[#allocation7 + $0x8] sm:$0xff] }
  0x1f   :  { %96 = vmatpush.msra.mxu0 %v77_v13  ;;  %231 = vmatpush.msra.mxu3 %v77_v13  ;;  %v160_v58 = vld [vmem:[#allocation7] sm:$0xff] }
  0x20   :  { %140 = vmatpush.msra.mxu1 %v123_v18  ;;  %181 = vmatpush.msra.mxu2 %v172_v37  ;;  %v246_v59 = vld [vmem:[%s429_s4 + $0x1] ss:$0 sm:$0xff]  ;;  %v247_v4 = vld [vmem:[%s429_s4 + $0x2] ss:$0 sm:$0xff] }
  0x21   :  { %97 = vmatpush.msra.mxu0 %v76_v15  ;;  %232 = vmatpush.msra.mxu3 %v76_v15 }
  0x22   :  { %141 = vmatpush.msra.mxu1 %v122_v20  ;;  %182 = vmatpush.msra.mxu2 %v171_v38 }
  0x23   :  { %98 = vmatpush.msra.mxu0 %v75_v17  ;;  %233 = vmatpush.msra.mxu3 %v75_v17 }
  0x24   :  { %142 = vmatpush.msra.mxu1 %v121_v22  ;;  %183 = vmatpush.msra.mxu2 %v170_v39 }
  0x25   :  { %99 = vmatpush.msra.mxu0 %v74_v19  ;;  %234 = vmatpush.msra.mxu3 %v74_v19 }
  0x26   :  { %143 = vmatpush.msra.mxu1 %v120_v24  ;;  %184 = vmatpush.msra.mxu2 %v169_v40 }
  0x27   :  { %100 = vmatpush.msra.mxu0 %v73_v21  ;;  %235 = vmatpush.msra.mxu3 %v73_v21 }
  0x28   :  { %144 = vmatpush.msra.mxu1 %v119_v26  ;;  %185 = vmatpush.msra.mxu2 %v168_v41 }
  0x29   :  { %101 = vmatpush.msra.mxu0 %v72_v23  ;;  %236 = vmatpush.msra.mxu3 %v72_v23 }
  0x2a   :  { %145 = vmatpush.msra.mxu1 %v118_v30  ;;  %186 = vmatpush.msra.mxu2 %v167_v43 }
  0x2b   :  { %102 = vmatpush.msra.mxu0 %v71_v25  ;;  %237 = vmatpush.msra.mxu3 %v71_v25 }
  0x2c   :  { %146 = vmatpush.msra.mxu1 %v117_v31  ;;  %187 = vmatpush.msra.mxu2 %v166_v44 }
  0x2d   :  { %103 = vmatpush.msra.mxu0 %v70_v27  ;;  %238 = vmatpush.msra.mxu3 %v70_v27 }
  0x2e   :  { %104 = vmatmul.f32.vlgmr.msra.gmra.mxu0 %v68_v28  ;;  %107 = vmatmul.f32.vlgmr.msra.gmra.mxu3 %v69_v29 }
  0x2f   :  { %147 = vmatpush.msra.mxu1 %v116_v32  ;;  %188 = vmatpush.msra.mxu2 %v165_v47 }
  0x31   :  { %148 = vmatpush.msra.mxu1 %v115_v33  ;;  %189 = vmatpush.msra.mxu2 %v164_v49 }
  0x33   :  { %190 = vmatpush.msra.mxu2 %v163_v55 }
  0x35   :  { %191 = vmatpush.msra.mxu2 %v162_v56 }
  0x37   :  { %192 = vmatpush.msra.mxu2 %v161_v57 }
  0x39   :  { %193 = vmatpush.msra.mxu2 %v160_v58 }
  0xab   :  { %v105_v45 = vpop.f32.mrf.mxu0 }
  0xac   :  { %v106_v46 = vadd.f32 %v245_v42, %v105_v45 }
  0xae   :  { %v111_v48 = vmul.f32 0.01, %v106_v46 }
  0xb0   :  { %v113_v50 = vmax.f32 %v106_v46, %v111_v48 }
  0xb1   :  { %v108_v51 = vpop.f32.mrf.mxu3 }
  0xb2   :  { %v109_v52 = vadd.f32 %v245_v42, %v108_v51  ;;  %149 = vmatmul.f32.vlgmr.msra.gmra.mxu1 %v113_v50 }
  0xb4   :  { %v112_v53 = vmul.f32 0.01, %v109_v52 }
  0xb6   :  { %v114_v54 = vmax.f32 %v109_v52, %v112_v53 }
  0xba   :  { %152 = vmatmul.f32.gmra.mxu1 %v114_v54 }
 0x12f   :  { %v150_v60 = vpop.f32.mrf.mxu1 }
 0x130   :  { %v151_v61 = vadd.f32 %v246_v59, %v150_v60 }
 0x132   :  { %v156_v62 = vmul.f32 0.01, %v151_v61 }
 0x134   :  { %v158_v63 = vmax.f32 %v151_v61, %v156_v62 }
 0x136   :  { %194 = vmatmul.f32.vlgmr.msra.gmra.mxu2 %v158_v63 }
 0x137   :  { %v153_v0 = vpop.f32.mrf.mxu1 }
 0x138   :  { %v154_v1 = vadd.f32 %v246_v59, %v153_v0 }
 0x13a   :  { %v157_v2 = vmul.f32 0.01, %v154_v1 }
 0x13c   :  { %v159_v3 = vmax.f32 %v154_v1, %v157_v2 }
 0x13e   :  { %197 = vmatmul.f32.gmra.mxu2 %v159_v3 }
 0x1b9   :  { %v195_v5 = vpop.f32.mrf.mxu2 }
 0x1ba   :  { %v196_v6 = vadd.f32 %v247_v4, %v195_v5 }
 0x1bc   :  { %201 = vst [vmem:[#allocation8] sm:$0xff] %v196_v6 }
 0x1c1   :  { %v198_v7 = vpop.f32.mrf.mxu2 }
 0x1c2   :  { %v199_v8 = vadd.f32 %v247_v4, %v198_v7 }
 0x1c4   :  { %202 = vst [vmem:[#allocation8 + $0x8] sm:$0xff] %v199_v8 }
 0x1c5   :  { %215 = dma.vmem_to_hbm [thread:$0]  %s208_s17, 256, %s210_s20, [#allocation4], %s351_s26, %s351_s26, %s352_s27  }
 0x1c6   :  { %348 = dma.done.wait [#allocation4], 256  }
 0x1c7   :  { %349 = vsyncadd [#allocation4], 4294967040 }
 0x1c8   :  { %220 = vsyncpa [#allocation3], 1 }
 0x1c9   :  { %221 = vsyncpa [#allocation6], 1 }
 0x1ca   :  { %222 = vsyncpa [#allocation4], 1 }

</bundles_post_ra>
